<compile_context>
chip_gen: v5e
topology: v5e:2x2
jax: 0.10.0
libtpu: 0.0.40
codegen_flags: <defaults>
</compile_context>

<pallas_src>
import functools

import jax
import jax.numpy as jnp
from jax.experimental import pallas as pl
from jax.experimental.pallas import tpu as pltpu


def _round_up(x, m):
    return ((x + m - 1) // m) * m


def _decoder_kernel(var_col, cid_ref, mid_ref, ctab_ref, mtab_ref,
                    wfc_ref, wfm_ref, bf_ref, wuv_ref, buv_ref, out_ref):
    """Fused gather -> f -> relu -> (u | v) for one batch tile."""
    tile_b = cid_ref.shape[0]
    cid = cid_ref[...]                                   # (tile_b, 1) int32
    mid = mid_ref[...]                                   # (tile_b, 1) int32

    # In-kernel embedding gather as a one-hot matmul (tables are VMEM-resident
    # and tiny here: vocab padded to 128 rows x 128 lanes, bf16).
    # TODO(synk): for large vocabularies replace with memory_space=pl.ANY +
    # manual DMA row gather instead of a one-hot MXU pass.
    tv = ctab_ref.shape[0]
    mv = mtab_ref.shape[0]
    c_onehot = (jax.lax.broadcasted_iota(jnp.int32, (tile_b, tv), 1)
                == cid).astype(jnp.bfloat16)
    m_onehot = (jax.lax.broadcasted_iota(jnp.int32, (tile_b, mv), 1)
                == mid).astype(jnp.bfloat16)
    c_emb = jnp.dot(c_onehot, ctab_ref[...], preferred_element_type=jnp.float32)
    m_emb = jnp.dot(m_onehot, mtab_ref[...], preferred_element_type=jnp.float32)

    # h = relu(center @ Wf_c + meta @ Wf_m + bf): split-Wf accumulation replaces
    # the concat; bias add + relu stay f32 on the VPU.  All operands lane-dense
    # (input_dim / hidden_dim zero-padded to 128).
    h = (jnp.dot(c_emb.astype(jnp.bfloat16), wfc_ref[...],
                 preferred_element_type=jnp.float32)
         + jnp.dot(m_emb.astype(jnp.bfloat16), wfm_ref[...],
                   preferred_element_type=jnp.float32)
         + bf_ref[...])
    h = jnp.maximum(h, 0.0)

    # Fused u/v head: one lane-padded MXU pass; the var column gets exp().
    z = jnp.dot(h.astype(wuv_ref.dtype), wuv_ref[...],
                preferred_element_type=jnp.float32) + buv_ref[...]

    n_pad = z.shape[1]
    blk = (var_col // 128) * 128                         # static Python int
    zb = z[:, blk:blk + 128]
    lane = jax.lax.broadcasted_iota(jnp.int32, zb.shape, 1)
    zb = jnp.where(lane == (var_col - blk), jnp.exp(zb), zb)
    if n_pad == 128:
        out = zb
    else:
        pieces = []
        if blk > 0:
            pieces.append(z[:, :blk])
        pieces.append(zb)
        if blk + 128 < n_pad:
            pieces.append(z[:, blk + 128:])
        out = jnp.concatenate(pieces, axis=1)
    out_ref[...] = out.astype(out_ref.dtype)


def lmc_decoder_core(params, center_table, center_ids, metadata_ids):
    """Runs the fused kernel.

    center_table: (Vc_pad, d_pad) bf16 table; center_ids: (B,) int32 row ids.
    Returns (mu (B, output_dim), var (B, 1)) in float32.
    """
    B = int(center_ids.shape[0])
    output_dim = params.output_dim
    n_pad = params.wuv.shape[1]
    d_pad = params.wf_c.shape[0]
    h_pad = params.wf_c.shape[1]

    # Batch tile: multiple of 16 (bf16 sublane packing); >= 2 grid steps when
    # B > 16 so both v7x TensorCores get work; capped at 1024 rows so tiles
    # stay large (low per-step overhead for v5e/v6e) yet tiny vs VMEM.
    if B <= 16:
        tile_b = 16
    else:
        tile_b = min(1024, _round_up(pl.cdiv(B, 2), 16))
    b_pad = _round_up(B, tile_b)
    grid = (b_pad // tile_b,)

    # Only the cheap int32 ids are padded (pad value 0 = padding_idx row;
    # padded output rows are sliced off below).
    cid = center_ids.astype(jnp.int32).reshape(-1, 1)
    mid = metadata_ids.astype(jnp.int32).reshape(-1, 1)
    if b_pad != B:
        cid = jnp.pad(cid, ((0, b_pad - B), (0, 0)))
        mid = jnp.pad(mid, ((0, b_pad - B), (0, 0)))

    tv = center_table.shape[0]
    mv = params.met_table.shape[0]

    flops = 2 * b_pad * (tv * d_pad + mv * d_pad
                         + 2 * d_pad * h_pad + h_pad * n_pad)
    bytes_accessed = (
        2 * b_pad * 4                                   # int32 ids in
        + b_pad * n_pad * 2                             # bf16 fused output
        + (center_table.size + params.met_table.size
           + params.wf_c.size + params.wf_m.size + params.wuv.size) * 2
        + (params.bf_p.size + params.buv.size) * 4)

    out = pl.pallas_call(
        functools.partial(_decoder_kernel, output_dim),
        out_shape=jax.ShapeDtypeStruct((b_pad, n_pad), jnp.bfloat16),
        grid=grid,
        in_specs=[
            # Batch-tiled int32 ids (the only per-row HBM input traffic).
            pl.BlockSpec((tile_b, 1), lambda i: (i, 0)),
            pl.BlockSpec((tile_b, 1), lambda i: (i, 0)),
            # Tables / weights / biases: constant block index -> VMEM-resident.
            pl.BlockSpec(center_table.shape, lambda i: (0, 0)),
            pl.BlockSpec(params.met_table.shape, lambda i: (0, 0)),
            pl.BlockSpec(params.wf_c.shape, lambda i: (0, 0)),
            pl.BlockSpec(params.wf_m.shape, lambda i: (0, 0)),
            pl.BlockSpec(params.bf_p.shape, lambda i: (0, 0)),
            pl.BlockSpec(params.wuv.shape, lambda i: (0, 0)),
            pl.BlockSpec(params.buv.shape, lambda i: (0, 0)),
        ],
        out_specs=pl.BlockSpec((tile_b, n_pad), lambda i: (i, 0)),
        compiler_params=pltpu.CompilerParams(
            dimension_semantics=("parallel",)),
        cost_estimate=pl.CostEstimate(
            flops=flops,
            transcendentals=b_pad * 128,
            bytes_accessed=bytes_accessed),
    )(cid, mid, center_table, params.met_table, params.wf_c, params.wf_m,
      params.bf_p, params.wuv, params.buv)

    mu = out[:B, :output_dim].astype(jnp.float32)
    var = out[:B, output_dim:output_dim + 1].astype(jnp.float32)
    return mu, var


class LMCDecoderParams:
    """Deterministic parameter container mirroring the PyTorch module shapes."""

    def __init__(self, token_vocab_size, metadata_vocab_size,
                 input_dim=100, hidden_dim=64, output_dim=100, seed=0):
        key = jax.random.PRNGKey(seed)
        k = jax.random.split(key, 8)
        s = 0.1
        self.input_dim = input_dim
        self.hidden_dim = hidden_dim
        self.output_dim = output_dim

        # f32 masters (used by the pure-JAX reference). padding_idx=0 -> row 0
        # of each embedding table forced to zero.
        tok = s * jax.random.normal(k[0], (token_vocab_size, input_dim), jnp.float32)
        self.token_embeddings = tok.at[0].set(0.0)
        met = s * jax.random.normal(k[1], (metadata_vocab_size, input_dim), jnp.float32)
        self.metadata_embeddings = met.at[0].set(0.0)
        self.wf = s * jax.random.normal(k[2], (input_dim * 2, hidden_dim), jnp.float32)
        self.bf = s * jax.random.normal(k[3], (1, hidden_dim), jnp.float32)
        self.wu = s * jax.random.normal(k[4], (hidden_dim, output_dim), jnp.float32)
        self.bu = s * jax.random.normal(k[5], (1, output_dim), jnp.float32)
        self.wv = s * jax.random.normal(k[6], (hidden_dim, 1), jnp.float32)
        self.bv = s * jax.random.normal(k[7], (1, 1), jnp.float32)

        # --- Kernel-side lane-padded / fused / bf16 copies ---------------------
        d_pad = _round_up(input_dim, 128)
        h_pad = _round_up(hidden_dim, 128)
        n_pad = _round_up(output_dim + 1, 128)
        tv_pad = _round_up(token_vocab_size, 128)
        mv_pad = _round_up(metadata_vocab_size, 128)

        # Lane-padded embedding tables (zero rows/cols never selected / multiply
        # against zero weight rows).
        tok_p = jnp.zeros((tv_pad, d_pad), jnp.float32)
        tok_p = tok_p.at[:token_vocab_size, :input_dim].set(self.token_embeddings)
        self.tok_table = tok_p.astype(jnp.bfloat16)
        met_p = jnp.zeros((mv_pad, d_pad), jnp.float32)
        met_p = met_p.at[:metadata_vocab_size, :input_dim].set(self.metadata_embeddings)
        self.met_table = met_p.astype(jnp.bfloat16)

        # Split Wf (no concat) and pad input/hidden dims to 128.
        wf_c = jnp.zeros((d_pad, h_pad), jnp.float32)
        wf_c = wf_c.at[:input_dim, :hidden_dim].set(self.wf[:input_dim])
        self.wf_c = wf_c.astype(jnp.bfloat16)
        wf_m = jnp.zeros((d_pad, h_pad), jnp.float32)
        wf_m = wf_m.at[:input_dim, :hidden_dim].set(self.wf[input_dim:])
        self.wf_m = wf_m.astype(jnp.bfloat16)
        self.bf_p = jnp.zeros((1, h_pad), jnp.float32).at[:, :hidden_dim].set(self.bf)

        # Fused u/v head: columns [0:output_dim] = Wu, column output_dim = Wv.
        wuv = jnp.zeros((h_pad, n_pad), jnp.float32)
        wuv = wuv.at[:hidden_dim, :output_dim].set(self.wu)
        wuv = wuv.at[:hidden_dim, output_dim].set(self.wv[:, 0])
        self.wuv = wuv.astype(jnp.bfloat16)
        buv = jnp.zeros((1, n_pad), jnp.float32)
        buv = buv.at[:, :output_dim].set(self.bu)
        buv = buv.at[:, output_dim].set(self.bv[0, 0])
        self.buv = buv


def lmc_decoder_forward(params, center_ids, metadata_ids, normalizer=None):
    """Replicates LMCDecoder.forward (eval mode: dropout = identity)."""
    if center_ids.ndim > metadata_ids.ndim:
        # Windowed center ids: gather + sum + normalize in the wrapper, then
        # reuse the same kernel by feeding the per-row embeddings as a pseudo
        # "vocab table" with identity ids (row i selects embedding i).
        # TODO(synk): for very large B stream this pseudo-table via
        # memory_space=pl.ANY + manual DMA instead of holding it whole in VMEM.
        ce = jnp.take(params.token_embeddings, center_ids, axis=0)
        ce = ce.sum(axis=1) / normalizer
        B = ce.shape[0]
        d_pad = params.wf_c.shape[0]
        rows = _round_up(B, 128)
        table = jnp.zeros((rows, d_pad), jnp.bfloat16)
        table = table.at[:B, :params.input_dim].set(ce.astype(jnp.bfloat16))
        cid = jnp.arange(B, dtype=jnp.int32)
        return lmc_decoder_core(params, table, cid, metadata_ids)
    # Common path: ids go straight into the kernel; the gather happens in VMEM.
    return lmc_decoder_core(params, params.tok_table, center_ids, metadata_ids)


def _reference_forward(params, center_ids, metadata_ids, normalizer=None):
    ce = jnp.take(params.token_embeddings, center_ids, axis=0)
    if center_ids.ndim > metadata_ids.ndim:
        ce = ce.sum(axis=1) / normalizer
    me = jnp.take(params.metadata_embeddings, metadata_ids, axis=0)
    merged = jnp.concatenate([ce, me], axis=-1)
    h = jnp.maximum(merged @ params.wf + params.bf, 0.0)
    return h @ params.wu + params.bu, jnp.exp(h @ params.wv + params.bv)


if __name__ == "__main__":
    # Small shapes consistent with the module.
    token_vocab_size = 50
    metadata_vocab_size = 20
    input_dim = 32
    hidden_dim = 32
    output_dim = 32
    batch = 8

    params = LMCDecoderParams(token_vocab_size, metadata_vocab_size,
                              input_dim=input_dim, hidden_dim=hidden_dim,
                              output_dim=output_dim, seed=0)

    key = jax.random.PRNGKey(0)
    kc, km, kw = jax.random.split(key, 3)
    center_ids = jax.random.randint(kc, (batch,), 0, token_vocab_size, dtype=jnp.int32)
    metadata_ids = jax.random.randint(km, (batch,), 0, metadata_vocab_size, dtype=jnp.int32)

    # Primary path: 1-D ids, gather fused into the kernel.
    mu, var = lmc_decoder_forward(params, center_ids, metadata_ids)
    jax.block_until_ready((mu, var))
    mu_ref, var_ref = _reference_forward(params, center_ids, metadata_ids)
    assert mu.shape == (batch, output_dim) and var.shape == (batch, 1)
    # bf16 MXU operands / bf16 output vs f32 reference -> bf16-level tolerances.
    assert jnp.allclose(mu, mu_ref, atol=3e-2, rtol=3e-2)
    assert jnp.allclose(var, var_ref, atol=3e-2, rtol=3e-2)

    # Windowed-center path (center_ids rank > metadata_ids rank).
    window = 3
    center_w = jax.random.randint(kw, (batch, window), 0, token_vocab_size, dtype=jnp.int32)
    normalizer = jnp.full((batch, 1), float(window), jnp.float32)
    mu_w, var_w = lmc_decoder_forward(params, center_w, metadata_ids, normalizer)
    jax.block_until_ready((mu_w, var_w))
    mu_wr, var_wr = _reference_forward(params, center_w, metadata_ids, normalizer)
    assert jnp.allclose(mu_w, mu_wr, atol=3e-2, rtol=3e-2)
    assert jnp.allclose(var_w, var_wr, atol=3e-2, rtol=3e-2)

    print("KERNEL_OK")
</pallas_src>

<mosaic_0001>
module attributes {stable_mosaic.version = 11 : i64} {
  func.func @_decoder_kernel(%arg0: i32, %arg1: memref<16x1xi32, #tpu.memory_space<vmem>>, %arg2: memref<16x1xi32, #tpu.memory_space<vmem>>, %arg3: memref<128x128xbf16, #tpu.memory_space<vmem>>, %arg4: memref<128x128xbf16, #tpu.memory_space<vmem>>, %arg5: memref<128x128xbf16, #tpu.memory_space<vmem>>, %arg6: memref<128x128xbf16, #tpu.memory_space<vmem>>, %arg7: memref<1x128xf32, #tpu.memory_space<vmem>>, %arg8: memref<128x128xbf16, #tpu.memory_space<vmem>>, %arg9: memref<1x128xf32, #tpu.memory_space<vmem>>, %arg10: memref<16x128xbf16, #tpu.memory_space<vmem>>) attributes {dimension_semantics = [#tpu.dimension_semantics<parallel>], iteration_bounds = array<i64: 1>, scalar_prefetch = 0 : i64, scratch_operands = 0 : i64, tpu.core_type = #tpu.core_type<tc>, window_params = [{transform_indices = @transform_0, window_bounds = array<i64: 16, 1>}, {transform_indices = @transform_1, window_bounds = array<i64: 16, 1>}, {pipeline_mode = #tpu.pipeline_mode<synchronous>, transform_indices = @transform_2, window_bounds = array<i64: 128, 128>}, {pipeline_mode = #tpu.pipeline_mode<synchronous>, transform_indices = @transform_3, window_bounds = array<i64: 128, 128>}, {pipeline_mode = #tpu.pipeline_mode<synchronous>, transform_indices = @transform_4, window_bounds = array<i64: 128, 128>}, {pipeline_mode = #tpu.pipeline_mode<synchronous>, transform_indices = @transform_5, window_bounds = array<i64: 128, 128>}, {pipeline_mode = #tpu.pipeline_mode<synchronous>, transform_indices = @transform_6, window_bounds = array<i64: 1, 128>}, {pipeline_mode = #tpu.pipeline_mode<synchronous>, transform_indices = @transform_7, window_bounds = array<i64: 128, 128>}, {pipeline_mode = #tpu.pipeline_mode<synchronous>, transform_indices = @transform_8, window_bounds = array<i64: 1, 128>}, {transform_indices = @transform_9, window_bounds = array<i64: 16, 128>}]} {
    %c0 = arith.constant 0 : index
    %c0_0 = arith.constant 0 : index
    %0 = vector.load %arg1[%c0, %c0_0] : memref<16x1xi32, #tpu.memory_space<vmem>>, vector<16x1xi32>
    %c0_1 = arith.constant 0 : index
    %c0_2 = arith.constant 0 : index
    %1 = vector.load %arg2[%c0_1, %c0_2] : memref<16x1xi32, #tpu.memory_space<vmem>>, vector<16x1xi32>
    %2 = tpu.iota {dimensions = array<i32: 1>} : vector<16x128xi32>
    %3 = vector.broadcast %0 : vector<16x1xi32> to vector<16x128xi32>
    %4 = arith.cmpi eq, %2, %3 : vector<16x128xi32>
    %5 = arith.extui %4 : vector<16x128xi1> to vector<16x128xi32>
    %6 = arith.sitofp %5 : vector<16x128xi32> to vector<16x128xf32>
    %7 = arith.truncf %6 : vector<16x128xf32> to vector<16x128xbf16>
    %8 = tpu.iota {dimensions = array<i32: 1>} : vector<16x128xi32>
    %9 = vector.broadcast %1 : vector<16x1xi32> to vector<16x128xi32>
    %10 = arith.cmpi eq, %8, %9 : vector<16x128xi32>
    %11 = arith.extui %10 : vector<16x128xi1> to vector<16x128xi32>
    %12 = arith.sitofp %11 : vector<16x128xi32> to vector<16x128xf32>
    %13 = arith.truncf %12 : vector<16x128xf32> to vector<16x128xbf16>
    %c0_3 = arith.constant 0 : index
    %c0_4 = arith.constant 0 : index
    %14 = vector.load %arg3[%c0_3, %c0_4] : memref<128x128xbf16, #tpu.memory_space<vmem>>, vector<128x128xbf16>
    %cst = arith.constant dense<0.000000e+00> : vector<16x128xf32>
    %15 = tpu.matmul %7, %14, %cst {dimension_numbers = #tpu.dot_dimension_numbers<[1], [0], [0], [1], [0, 0, 1, 1], [], []>} : vector<16x128xbf16>, vector<128x128xbf16>, vector<16x128xf32> -> vector<16x128xf32>
    %c0_5 = arith.constant 0 : index
    %c0_6 = arith.constant 0 : index
    %16 = vector.load %arg4[%c0_5, %c0_6] : memref<128x128xbf16, #tpu.memory_space<vmem>>, vector<128x128xbf16>
    %cst_7 = arith.constant dense<0.000000e+00> : vector<16x128xf32>
    %17 = tpu.matmul %13, %16, %cst_7 {dimension_numbers = #tpu.dot_dimension_numbers<[1], [0], [0], [1], [0, 0, 1, 1], [], []>} : vector<16x128xbf16>, vector<128x128xbf16>, vector<16x128xf32> -> vector<16x128xf32>
    %18 = arith.truncf %15 : vector<16x128xf32> to vector<16x128xbf16>
    %c0_8 = arith.constant 0 : index
    %c0_9 = arith.constant 0 : index
    %19 = vector.load %arg5[%c0_8, %c0_9] : memref<128x128xbf16, #tpu.memory_space<vmem>>, vector<128x128xbf16>
    %cst_10 = arith.constant dense<0.000000e+00> : vector<16x128xf32>
    %20 = tpu.matmul %18, %19, %cst_10 {dimension_numbers = #tpu.dot_dimension_numbers<[1], [0], [0], [1], [0, 0, 1, 1], [], []>} : vector<16x128xbf16>, vector<128x128xbf16>, vector<16x128xf32> -> vector<16x128xf32>
    %21 = arith.truncf %17 : vector<16x128xf32> to vector<16x128xbf16>
    %c0_11 = arith.constant 0 : index
    %c0_12 = arith.constant 0 : index
    %22 = vector.load %arg6[%c0_11, %c0_12] : memref<128x128xbf16, #tpu.memory_space<vmem>>, vector<128x128xbf16>
    %cst_13 = arith.constant dense<0.000000e+00> : vector<16x128xf32>
    %23 = tpu.matmul %21, %22, %cst_13 {dimension_numbers = #tpu.dot_dimension_numbers<[1], [0], [0], [1], [0, 0, 1, 1], [], []>} : vector<16x128xbf16>, vector<128x128xbf16>, vector<16x128xf32> -> vector<16x128xf32>
    %24 = arith.addf %20, %23 : vector<16x128xf32>
    %c0_14 = arith.constant 0 : index
    %c0_15 = arith.constant 0 : index
    %25 = vector.load %arg7[%c0_14, %c0_15] : memref<1x128xf32, #tpu.memory_space<vmem>>, vector<1x128xf32>
    %26 = vector.broadcast %25 : vector<1x128xf32> to vector<16x128xf32>
    %27 = arith.addf %24, %26 : vector<16x128xf32>
    %cst_16 = arith.constant 0.000000e+00 : f32
    %28 = vector.broadcast %cst_16 : f32 to vector<16x128xf32>
    %29 = arith.maximumf %27, %28 : vector<16x128xf32>
    %30 = arith.truncf %29 : vector<16x128xf32> to vector<16x128xbf16>
    %c0_17 = arith.constant 0 : index
    %c0_18 = arith.constant 0 : index
    %31 = vector.load %arg8[%c0_17, %c0_18] : memref<128x128xbf16, #tpu.memory_space<vmem>>, vector<128x128xbf16>
    %cst_19 = arith.constant dense<0.000000e+00> : vector<16x128xf32>
    %32 = tpu.matmul %30, %31, %cst_19 {dimension_numbers = #tpu.dot_dimension_numbers<[1], [0], [0], [1], [0, 0, 1, 1], [], []>} : vector<16x128xbf16>, vector<128x128xbf16>, vector<16x128xf32> -> vector<16x128xf32>
    %c0_20 = arith.constant 0 : index
    %c0_21 = arith.constant 0 : index
    %33 = vector.load %arg9[%c0_20, %c0_21] : memref<1x128xf32, #tpu.memory_space<vmem>>, vector<1x128xf32>
    %34 = vector.broadcast %33 : vector<1x128xf32> to vector<16x128xf32>
    %35 = arith.addf %32, %34 : vector<16x128xf32>
    %36 = tpu.iota {dimensions = array<i32: 1>} : vector<16x128xi32>
    %c32_i32 = arith.constant 32 : i32
    %37 = vector.broadcast %c32_i32 : i32 to vector<16x128xi32>
    %38 = arith.cmpi eq, %36, %37 : vector<16x128xi32>
    %39 = math.exp %35 : vector<16x128xf32>
    %40 = arith.select %38, %39, %35 : vector<16x128xi1>, vector<16x128xf32>
    %41 = arith.truncf %40 : vector<16x128xf32> to vector<16x128xbf16>
    %c0_22 = arith.constant 0 : index
    %c0_23 = arith.constant 0 : index
    %42 = vector.load %arg10[%c0_22, %c0_23] : memref<16x128xbf16, #tpu.memory_space<vmem>>, vector<16x128xbf16>
    tpu.vector_store %arg10[%c0_22, %c0_23], %41 {strides = array<i32>} : memref<16x128xbf16, #tpu.memory_space<vmem>>, vector<16x128xbf16>,
    return
  }
  func.func @transform_0(%arg0: i32) -> (i32, i32) {
    %c0_i32 = arith.constant 0 : i32
    %c0_i32_0 = arith.constant 0 : i32
    return %arg0, %c0_i32 : i32, i32
  }
  func.func @transform_1(%arg0: i32) -> (i32, i32) {
    %c0_i32 = arith.constant 0 : i32
    %c0_i32_0 = arith.constant 0 : i32
    return %arg0, %c0_i32 : i32, i32
  }
  func.func @transform_2(%arg0: i32) -> (i32, i32) {
    %c0_i32 = arith.constant 0 : i32
    %c0_i32_0 = arith.constant 0 : i32
    %c0_i32_1 = arith.constant 0 : i32
    return %c0_i32, %c0_i32_0 : i32, i32
  }
  func.func @transform_3(%arg0: i32) -> (i32, i32) {
    %c0_i32 = arith.constant 0 : i32
    %c0_i32_0 = arith.constant 0 : i32
    %c0_i32_1 = arith.constant 0 : i32
    return %c0_i32, %c0_i32_0 : i32, i32
  }
  func.func @transform_4(%arg0: i32) -> (i32, i32) {
    %c0_i32 = arith.constant 0 : i32
    %c0_i32_0 = arith.constant 0 : i32
    %c0_i32_1 = arith.constant 0 : i32
    return %c0_i32, %c0_i32_0 : i32, i32
  }
  func.func @transform_5(%arg0: i32) -> (i32, i32) {
    %c0_i32 = arith.constant 0 : i32
    %c0_i32_0 = arith.constant 0 : i32
    %c0_i32_1 = arith.constant 0 : i32
    return %c0_i32, %c0_i32_0 : i32, i32
  }
  func.func @transform_6(%arg0: i32) -> (i32, i32) {
    %c0_i32 = arith.constant 0 : i32
    %c0_i32_0 = arith.constant 0 : i32
    %c0_i32_1 = arith.constant 0 : i32
    return %c0_i32, %c0_i32_0 : i32, i32
  }
  func.func @transform_7(%arg0: i32) -> (i32, i32) {
    %c0_i32 = arith.constant 0 : i32
    %c0_i32_0 = arith.constant 0 : i32
    %c0_i32_1 = arith.constant 0 : i32
    return %c0_i32, %c0_i32_0 : i32, i32
  }
  func.func @transform_8(%arg0: i32) -> (i32, i32) {
    %c0_i32 = arith.constant 0 : i32
    %c0_i32_0 = arith.constant 0 : i32
    %c0_i32_1 = arith.constant 0 : i32
    return %c0_i32, %c0_i32_0 : i32, i32
  }
  func.func @transform_9(%arg0: i32) -> (i32, i32) {
    %c0_i32 = arith.constant 0 : i32
    %c0_i32_0 = arith.constant 0 : i32
    return %arg0, %c0_i32 : i32, i32
  }
}

</mosaic_0001>

<bundles_post_ra>
// kernel: tpu_custom_call.1
= control target key start
LH: loop header
LB: loop body
LE: loop exit
PB: predicated region body
PF: predicated region fallthrough
CT: control target
= control target key end

     0   :  { %14 = vsyncpa [#allocation3], 0  ;;  %s1084_s0 = inlined_call_operand.vmem [shape: s32[16,1], index: 0, kind: input, shape index: {}]   ;;  %s1085_s1 = inlined_call_operand.vmem [shape: s32[16,1], index: 1, kind: input, shape index: {}]   ;;  %s1086_s2 = inlined_call_operand.hbm [shape: bf16[128,128], index: 2, kind: input, shape index: {}]   ;;  %s1087_s3 = inlined_call_operand.hbm [shape: bf16[128,128], index: 3, kind: input, shape index: {}]   ;;  %s1088_s4 = inlined_call_operand.hbm [shape: bf16[128,128], index: 4, kind: input, shape index: {}]   ;;  %s1089_s5 = inlined_call_operand.hbm [shape: bf16[128,128], index: 5, kind: input, shape index: {}]   ;;  %s1090_s6 = inlined_call_operand.vmem [shape: f32[1,128], index: 6, kind: input, shape index: {}]   ;;  %s1091_s7 = inlined_call_operand.hbm [shape: bf16[128,128], index: 7, kind: input, shape index: {}]   ;;  %s1092_s8 = inlined_call_operand.vmem [shape: f32[1,128], index: 8, kind: input, shape index: {}]   ;;  %s1093_s9 = inlined_call_operand.hbm [shape: bf16[16,128], index: 9, kind: output, shape index: {}]  }
   0x1   :  { %15 = vsyncpa [#allocation6], 0 }
   0x2   :  { %16 = vsyncpa [#allocation9], 0 }
   0x3   :  { %17 = vsyncpa [#allocation4], 0  ;;  %s39_s11 = sshll.u32 %s1087_s3, 4  ;;  %s963_s12 = smov [#allocation5]   ;;  %s40_s11 = int_to_ptr.hbm [resolvable:$true] %s39_s11 }
   0x4   :  { %s41_s13 = sshll.u32 %s963_s12, 4  ;;  %s65_s16 = sshll.u32 %s1089_s5, 4  ;;  %s42_s13 = int_to_ptr.vmem [resolvable:$true] %s41_s13  ;;  %s66_s16 = int_to_ptr.hbm [resolvable:$true] %s65_s16 }
   0x5   :  { %s964_s17 = smov 64   ;;  %s965_s18 = smov 4  }
   0x6   :  { %47 = dma.hbm_to_vmem [thread:$0]  %s40_s11, 1024, %s42_s13, [#allocation6], %s964_s17, %s964_s17, %s965_s18  }
   0x7   :  { %s966_s19 = smov [#allocation8]   ;;  %s26_s3 = sshll.u32 %s1086_s2, 4  ;;  %s27_s3 = int_to_ptr.hbm [resolvable:$true] %s26_s3 }
   0x8   :  { %s67_s20 = sshll.u32 %s966_s19, 4  ;;  %s52_s24 = sshll.u32 %s1088_s4, 4  ;;  %s68_s20 = int_to_ptr.vmem [resolvable:$true] %s67_s20  ;;  %s53_s24 = int_to_ptr.hbm [resolvable:$true] %s52_s24 }
   0x9   :  { %73 = dma.hbm_to_vmem [thread:$0]  %s66_s16, 1024, %s68_s20, [#allocation9], %s964_s17, %s964_s17, %s965_s18  }
   0xa   :  { %s967_s25 = smov [#allocation2]   ;;  %s968_s27 = smov [#allocation7]  }
   0xb   :  { %s28_s26 = sshll.u32 %s967_s25, 4  ;;  %s54_s2 = sshll.u32 %s968_s27, 4  ;;  %s29_s26 = int_to_ptr.vmem [resolvable:$true] %s28_s26  ;;  %s55_s2 = int_to_ptr.vmem [resolvable:$true] %s54_s2 }
   0xc   :  { %34 = dma.hbm_to_vmem [thread:$0]  %s27_s3, 1024, %s29_s26, [#allocation3], %s964_s17, %s964_s17, %s965_s18  }
   0xd   :  { %s80_s30 = sshll.u32 %s1091_s7, 4  ;;  %s969_s4 = smov [#allocation10]   ;;  %s81_s30 = int_to_ptr.hbm [resolvable:$true] %s80_s30 }
   0xe   :  { %60 = dma.hbm_to_vmem [thread:$0]  %s53_s24, 1024, %s55_s2, [#allocation6], %s964_s17, %s964_s17, %s965_s18  }
   0xf   :  { %s82_s10 = sshll.u32 %s969_s4, 4  ;;  %s83_s10 = int_to_ptr.vmem [resolvable:$true] %s82_s10 }
  0x10   :  { %88 = dma.hbm_to_vmem [thread:$0]  %s81_s30, 1024, %s83_s10, [#allocation9], %s964_s17, %s964_s17, %s965_s18  }
  0x11   :  { %955 = dma.done.wait [#allocation3], 1024  }
  0x12   :  { %956 = vsyncadd [#allocation3], 4294966272 }
  0x13   :  { %957 = dma.done.wait [#allocation6], 2048  }
  0x14   :  { %958 = vsyncadd [#allocation6], 4294965248 }
  0x15   :  { %959 = dma.done.wait [#allocation9], 2048  }
  0x16   :  { %960 = vsyncadd [#allocation9], 4294965248  ;;  %v970_v0 = vmov 0   ;;  %v113_v1 = vld [vmem:[%s1085_s1] sm:$0xff]  ;;  %v755_v3 = vld [vmem:[#allocation2 + $0x38] sm:$0xff]  ;;  %v115_v33 = vlaneseq  ;;  %s565_s23 = sshll.u32 %s1093_s9, 4  ;;  %s566_s23 = int_to_ptr.hbm [resolvable:$true] %s565_s23 }
  0x17   :  { %804 = vset.pattern.permute.xlu1 %v970_v0  ;;  %803 = vset.pattern.permute.xlu0 %v970_v0  ;;  %v111_v2 = vld [vmem:[%s1084_s0] sm:$0xff]  ;;  %v763_v4 = vld [vmem:[#allocation5 + $0x38] sm:$0xff]  ;;  %v754_v5 = vld [vmem:[#allocation2 + $0x30] sm:$0xff]  ;;  %v971_v37 = vmov 1.0|1.0  }
  0x18   :  { %131 = vperm.xlu1 %804, %v113_v1   ;;  %118 = vperm.xlu0 %803, %v111_v2   ;;  %v762_v6 = vld [vmem:[#allocation5 + $0x30] sm:$0xff]  ;;  %v114_v7 = vld [vmem:[%s1085_s1 + $0x8] sm:$0xff]  ;;  %v752_v11 = vld [vmem:[#allocation2 + $0x20] sm:$0xff]  ;;  %v1065_v34 = vand.u32 127, %v115_v33 }
  0x19   :  { %207 = vmatpush.bf16.msra.mxu0 %v755_v3  ;;  %285 = vmatpush.bf16.msra.mxu1 %v763_v4  ;;  %v112_v8 = vld [vmem:[%s1084_s0 + $0x8] sm:$0xff]  ;;  %v760_v12 = vld [vmem:[#allocation5 + $0x20] sm:$0xff]  ;;  %v751_v13 = vld [vmem:[#allocation2 + $0x18] sm:$0xff] }
  0x1a   :  { %v753_v9 = vld [vmem:[#allocation2 + $0x28] sm:$0xff]  ;;  %v759_v14 = vld [vmem:[#allocation5 + $0x18] sm:$0xff]  ;;  %v750_v15 = vld [vmem:[#allocation2 + $0x10] sm:$0xff]  ;;  %vm548_vm6 = vcmp.eq.s32.totalorder %v1065_v34, 32 }
  0x1b   :  { %v761_v10 = vld [vmem:[#allocation5 + $0x28] sm:$0xff]  ;;  %v758_v16 = vld [vmem:[#allocation5 + $0x10] sm:$0xff]  ;;  %v748_v19 = vld [vmem:[#allocation2] sm:$0xff] }
  0x1c   :  { %v749_v17 = vld [vmem:[#allocation2 + $0x8] sm:$0xff]  ;;  %v756_v20 = vld [vmem:[#allocation5] sm:$0xff]  ;;  %v779_v21 = vld [vmem:[#allocation8 + $0x38] sm:$0xff] }
  0x1d   :  { %208 = vmatpush.bf16.msra.mxu0 %v754_v5  ;;  %286 = vmatpush.bf16.msra.mxu1 %v762_v6  ;;  %v757_v18 = vld [vmem:[#allocation5 + $0x8] sm:$0xff]  ;;  %v771_v22 = vld [vmem:[#allocation7 + $0x38] sm:$0xff]  ;;  %v778_v23 = vld [vmem:[#allocation8 + $0x30] sm:$0xff] }
  0x1e   :  { %381 = vmatpush.bf16.msra.mxu2 %v779_v21  ;;  %443 = vmatpush.bf16.msra.mxu3 %v771_v22  ;;  %v770_v24 = vld [vmem:[#allocation7 + $0x30] sm:$0xff]  ;;  %v777_v25 = vld [vmem:[#allocation8 + $0x28] sm:$0xff]  ;;  %v776_v27 = vld [vmem:[#allocation8 + $0x20] sm:$0xff] }
  0x1f   :  { %v769_v26 = vld [vmem:[#allocation7 + $0x28] sm:$0xff]  ;;  %v768_v28 = vld [vmem:[#allocation7 + $0x20] sm:$0xff]  ;;  %v775_v29 = vld [vmem:[#allocation8 + $0x18] sm:$0xff] }
  0x20   :  { %134 = vperm.xlu1 %804, %v114_v7   ;;  %121 = vperm.xlu0 %803, %v112_v8   ;;  %v767_v30 = vld [vmem:[#allocation7 + $0x18] sm:$0xff]  ;;  %v774_v38 = vld [vmem:[#allocation8 + $0x10] sm:$0xff]  ;;  %v773_v40 = vld [vmem:[#allocation8 + $0x8] sm:$0xff] }
  0x21   :  { %209 = vmatpush.bf16.msra.mxu0 %v753_v9  ;;  %287 = vmatpush.bf16.msra.mxu1 %v761_v10  ;;  %v766_v39 = vld [vmem:[#allocation7 + $0x10] sm:$0xff]  ;;  %v765_v41 = vld [vmem:[#allocation7 + $0x8] sm:$0xff]  ;;  %v772_v42 = vld [vmem:[#allocation8] sm:$0xff] }
  0x22   :  { %382 = vmatpush.bf16.msra.mxu2 %v778_v23  ;;  %444 = vmatpush.bf16.msra.mxu3 %v770_v24  ;;  %v764_v43 = vld [vmem:[#allocation7] sm:$0xff]  ;;  %v787_v44 = vld [vmem:[#allocation10 + $0x38] sm:$0xff]  ;;  %v786_v45 = vld [vmem:[#allocation10 + $0x30] sm:$0xff] }
  0x23   :  { %v785_v46 = vld [vmem:[#allocation10 + $0x28] sm:$0xff]  ;;  %v784_v47 = vld [vmem:[#allocation10 + $0x20] sm:$0xff]  ;;  %v783_v54 = vld [vmem:[#allocation10 + $0x18] sm:$0xff] }
  0x24   :  { %v782_v55 = vld [vmem:[#allocation10 + $0x10] sm:$0xff]  ;;  %v781_v56 = vld [vmem:[#allocation10 + $0x8] sm:$0xff]  ;;  %v780_v57 = vld [vmem:[#allocation10] sm:$0xff] }
  0x25   :  { %210 = vmatpush.bf16.msra.mxu0 %v752_v11  ;;  %288 = vmatpush.bf16.msra.mxu1 %v760_v12  ;;  %v805_v61 = vld [vmem:[%s1090_s6] ss:$0 sm:$0xff]  ;;  %s972_s6 = smov [#allocation11]  }
  0x26   :  { %383 = vmatpush.bf16.msra.mxu2 %v777_v25  ;;  %445 = vmatpush.bf16.msra.mxu3 %v769_v26  ;;  %v806_v6 = vld [vmem:[%s1092_s8] ss:$0 sm:$0xff]  ;;  %s563_s22 = sshll.u32 %s972_s6, 4  ;;  %s564_s22 = int_to_ptr.vmem [resolvable:$true] %s563_s22 }
  0x29   :  { %211 = vmatpush.bf16.msra.mxu0 %v751_v13  ;;  %289 = vmatpush.bf16.msra.mxu1 %v759_v14 }
  0x2a   :  { %384 = vmatpush.bf16.msra.mxu2 %v776_v27  ;;  %446 = vmatpush.bf16.msra.mxu3 %v768_v28 }
  0x2d   :  { %212 = vmatpush.bf16.msra.mxu0 %v750_v15  ;;  %290 = vmatpush.bf16.msra.mxu1 %v758_v16 }
  0x2e   :  { %385 = vmatpush.bf16.msra.mxu2 %v775_v29  ;;  %447 = vmatpush.bf16.msra.mxu3 %v767_v30 }
  0x31   :  { %213 = vmatpush.bf16.msra.mxu0 %v749_v17  ;;  %291 = vmatpush.bf16.msra.mxu1 %v757_v18 }
  0x32   :  { %386 = vmatpush.bf16.msra.mxu2 %v774_v38  ;;  %448 = vmatpush.bf16.msra.mxu3 %v766_v39 }
  0x35   :  { %214 = vmatpush.bf16.msra.mxu0 %v748_v19  ;;  %292 = vmatpush.bf16.msra.mxu1 %v756_v20 }
  0x36   :  { %387 = vmatpush.bf16.msra.mxu2 %v773_v40  ;;  %449 = vmatpush.bf16.msra.mxu3 %v765_v41 }
  0x39   :  { %534 = vmatpush.bf16.msrb.mxu0 %v787_v44 }
  0x3a   :  { %388 = vmatpush.bf16.msra.mxu2 %v772_v42  ;;  %450 = vmatpush.bf16.msra.mxu3 %v764_v43 }
  0x3d   :  { %535 = vmatpush.bf16.msrb.mxu0 %v786_v45 }
  0x41   :  { %536 = vmatpush.bf16.msrb.mxu0 %v785_v46 }
  0x45   :  { %537 = vmatpush.bf16.msrb.mxu0 %v784_v47 }
  0x49   :  { %538 = vmatpush.bf16.msrb.mxu0 %v783_v54 }
  0x4d   :  { %539 = vmatpush.bf16.msrb.mxu0 %v782_v55 }
  0x51   :  { %540 = vmatpush.bf16.msrb.mxu0 %v781_v56 }
  0x55   :  { %541 = vmatpush.bf16.msrb.mxu0 %v780_v57 }
  0x8a   :  { %v132_v31 = vpop.permute.xlu1 %131  ;;  %v119_v32 = vpop.permute.xlu0 %118 }
  0x8b   :  { %vm136_vm0 = vcmp.eq.s32.totalorder %v1065_v34, %v132_v31  ;;  %vm123_vm3 = vcmp.eq.s32.totalorder %v1065_v34, %v119_v32 }
  0x92   :  { %v135_v35 = vpop.permute.xlu1 %134  ;;  %v122_v36 = vpop.permute.xlu0 %121 }
  0x93   :  { %vm137_vm1 = vcmp.eq.s32.totalorder %v1065_v34, %v135_v35  ;;  %vm124_vm2 = vcmp.eq.s32.totalorder %v1065_v34, %v122_v36 }
  0x94   :  { %vm650_vm4 = vmpackc.low %vm137_vm1, %vm136_vm0 }
  0x95   :  { %vm616_vm5 = vmpackc.low %vm124_vm2, %vm123_vm3  ;;  %651 = vmatmul.msk.bf16.vlgmr.msra.gmra.mxu1 %vm650_vm4, %v971_v37 }
  0x96   :  { %617 = vmatmul.msk.bf16.vlgmr.msra.gmra.mxu0 %vm616_vm5, %v971_v37 }
 0x112   :  { %v294_v48 = vpop.f32.mrf.mxu1 }
 0x113   :  { %v216_v49 = vpop.f32.mrf.mxu0 }
 0x11a   :  { %v296_v50 = vpop.f32.mrf.mxu1 }
 0x11b   :  { %v218_v51 = vpop.f32.mrf.mxu0  ;;  %v316_v52 = vpack.c.bf16 %v296_v50, %v294_v48 }
 0x11c   :  { %v299_v53 = vpack.c.bf16 %v218_v51, %v216_v49 }
 0x11d   :  { %389 = vmatmul.bf16.vlgmr.msra.gmra.mxu2 %v316_v52 }
 0x11e   :  { %451 = vmatmul.bf16.vlgmr.msra.gmra.mxu3 %v299_v53 }
 0x1a0   :  { %v390_v58 = vpop.f32.mrf.mxu2 }
 0x1a1   :  { %v452_v59 = vpop.f32.mrf.mxu3 }
 0x1a2   :  { %v453_v60 = vadd.f32 %v452_v59, %v390_v58 }
 0x1a4   :  { %v461_v0 = vadd.f32 %v805_v61, %v453_v60 }
 0x1a6   :  { %v463_v3 = vmax.f32 %v461_v0, 0.0 }
 0x1a8   :  { %v392_v62 = vpop.f32.mrf.mxu2 }
 0x1a9   :  { %v454_v63 = vpop.f32.mrf.mxu3 }
 0x1aa   :  { %v455_v1 = vadd.f32 %v454_v63, %v392_v62 }
 0x1ac   :  { %v462_v2 = vadd.f32 %v805_v61, %v455_v1 }
 0x1ae   :  { %v464_v4 = vmax.f32 %v462_v2, 0.0 }
 0x1b0   :  { %v465_v5 = vpack.c.bf16 %v464_v4, %v463_v3 }
 0x1b2   :  { %542 = vmatmul.bf16.vlgmr.msrb.gmra.mxu0 %v465_v5 }
 0x22f   :  { %v543_v7 = vpop.f32.mrf.mxu0 }
 0x230   :  { %v544_v8 = vadd.f32 %v806_v6, %v543_v7 }
 0x232   :  { %v549_v9 = vmul.f32 1.442695, %v544_v8 }
 0x234   :  { %807 = vpow2.f32 %v549_v9 }
 0x237   :  { %v545_v10 = vpop.f32.mrf.mxu0 }
 0x238   :  { %v546_v11 = vadd.f32 %v806_v6, %v545_v10 }
 0x23a   :  { %v551_v12 = vmul.f32 1.442695, %v546_v11  ;;  %v808_v13 = vpop.eup %807 }
 0x23b   :  { %v553_v15 = vsel %vm548_vm6, %v808_v13, %v544_v8 }
 0x23c   :  { %809 = vpow2.f32 %v551_v12 }
 0x242   :  { %v810_v14 = vpop.eup %809 }
 0x243   :  { %v554_v16 = vsel %vm548_vm6, %v810_v14, %v546_v11 }
 0x244   :  { %v791_v17 = vpack.c.bf16 %v554_v16, %v553_v15 }
 0x246   :  { %792 = vst [vmem:[#allocation11] sm:$0xff] %v791_v17  }
 0x247   :  { %571 = dma.vmem_to_hbm [thread:$0]  %s564_s22, 128, %s566_s23, [#allocation4], %s964_s17, %s964_s17, %s965_s18  }
 0x248   :  { %961 = dma.done.wait [#allocation4], 128  }
 0x249   :  { %962 = vsyncadd [#allocation4], 4294967168 }
 0x24a   :  { %576 = vsyncpa [#allocation3], 1 }
 0x24b   :  { %577 = vsyncpa [#allocation6], 1 }
 0x24c   :  { %578 = vsyncpa [#allocation9], 1 }
 0x24d   :  { %579 = vsyncpa [#allocation4], 1 }

</bundles_post_ra>
